<compile_context>
chip_gen: v7x
topology: tpu7x:2x2x1
jax: 0.10.0
libtpu: 0.0.40
codegen_flags: <defaults>
</compile_context>

<pallas_src>
import functools

import jax
import jax.numpy as jnp
from jax import lax
from jax.experimental import pallas as pl
from jax.experimental.pallas import tpu as pltpu


def _postnet_fused_kernel(x_ref, w_ref, b_ref, res_ref, o_ref,
                          act_ref, xpad_ref, col_ref,
                          *, B, L, K, lp_even, lp_odd, precision):
    """All PostNet layers in one kernel; grid axis = layer index.

    x_ref   : VMEM (C, B*L)          input audio (constant block -> one DMA in)
    w_ref   : VMEM (1, C, K*C)       this layer's weight, im2col layout
    b_ref   : VMEM (1, C, 1)         this layer's bias column (f32)
    res_ref : SMEM (n_layers,)       residual scalars
    o_ref   : VMEM (C, B*L)          output (constant block -> one DMA out)
    act_ref : VMEM (C, B*L) f32      resident activation / accumulator
    xpad_ref: VMEM (C, B*(L+K-1))    per-batch zero-padded activation
    col_ref : VMEM (K*C, B*L)        im2col matrix -> single matmul per layer
    """
    i = pl.program_id(0)
    C = act_ref.shape[0]
    Lp = L + K - 1

    # Layer 0: pull the input once into the resident f32 accumulator.
    @pl.when(i == 0)
    def _():
        act_ref[...] = x_ref[...].astype(jnp.float32)

    # Zero-pad per batch element; asymmetric pad flips direction on odd layers.
    # Two static offsets selected by layer parity (keeps slice starts static).
    xpad_ref[...] = jnp.zeros_like(xpad_ref)

    def _place(lp):
        for b in range(B):
            xpad_ref[:, b * Lp + lp: b * Lp + lp + L] = (
                act_ref[:, b * L:(b + 1) * L].astype(xpad_ref.dtype))

    @pl.when(i % 2 == 0)
    def _():
        _place(lp_even)

    @pl.when(i % 2 == 1)
    def _():
        _place(lp_odd)

    # im2col: col[k*C + c, b*L + t] = xpad[c, b*Lp + t + k]  (static offsets)
    for k in range(K):
        for b in range(B):
            col_ref[k * C:(k + 1) * C, b * L:(b + 1) * L] = (
                xpad_ref[:, b * Lp + k: b * Lp + k + L])

    # One MXU matmul per layer: (C, K*C) @ (K*C, B*L) -> (C, B*L), f32 acc.
    y = jnp.dot(w_ref[0], col_ref[...],
                preferred_element_type=jnp.float32, precision=precision)
    y = y + b_ref[0]
    # residual update: audio += res[i] * tanh(conv(audio_pad))  (tanh -> EUP)
    act_ref[...] = act_ref[...] + res_ref[i] * jnp.tanh(y)

    # Constant output block index -> actual HBM writeback happens once at the end.
    o_ref[...] = act_ref[...].astype(o_ref.dtype)


def postnet_forward(audio, weights, biases, res_weights, kernel_size,
                    compute_dtype=jnp.float32):
    """PostNet.forward — all layers fused into a single pallas_call."""
    B, C, L = audio.shape
    K = kernel_size
    n_layers = len(weights)
    for w in weights:
        # residual add (audio += ...) requires equal channel counts everywhere,
        # exactly as the PyTorch module implicitly requires.
        assert w.shape == (C, C, K)

    # im2col weight layout: w2[c_out, k*C + c_in] = w[c_out, c_in, k]
    w_stack = jnp.stack(
        [jnp.transpose(w, (0, 2, 1)).reshape(C, K * C) for w in weights]
    ).astype(compute_dtype)                                      # (n_layers, C, K*C)
    b_stack = jnp.stack([b.reshape(C, 1) for b in biases]).astype(jnp.float32)
    res = res_weights.astype(jnp.float32).reshape(n_layers)

    # Fold batch into the matmul N dim -> lane-dense (C, B*L) activation.
    x2d = jnp.transpose(audio, (1, 0, 2)).reshape(C, B * L)

    lp_even = (K - 1) // 2
    lp_odd = (K - 1) - lp_even
    precision = (lax.Precision.HIGHEST if compute_dtype == jnp.float32
                 else lax.Precision.DEFAULT)

    kernel = functools.partial(
        _postnet_fused_kernel, B=B, L=L, K=K,
        lp_even=lp_even, lp_odd=lp_odd, precision=precision)

    out2d = pl.pallas_call(
        kernel,
        out_shape=jax.ShapeDtypeStruct((C, B * L), audio.dtype),
        grid=(n_layers,),
        in_specs=[
            pl.BlockSpec((C, B * L), lambda i: (0, 0)),         # audio (fetched once)
            pl.BlockSpec((1, C, K * C), lambda i: (i, 0, 0)),   # per-layer weight
            pl.BlockSpec((1, C, 1), lambda i: (i, 0, 0)),       # per-layer bias
            pl.BlockSpec(memory_space=pltpu.SMEM),              # residual scalars
        ],
        out_specs=pl.BlockSpec((C, B * L), lambda i: (0, 0)),
        scratch_shapes=[
            pltpu.VMEM((C, B * L), jnp.float32),                # resident activation
            pltpu.VMEM((C, B * (L + K - 1)), compute_dtype),    # padded activation
            pltpu.VMEM((K * C, B * L), compute_dtype),          # im2col
        ],
        input_output_aliases={0: 0},                            # in-place residual update
        compiler_params=pltpu.CompilerParams(
            dimension_semantics=("arbitrary",),                 # layers are sequential
        ),
    )(x2d, w_stack, b_stack, res)

    return out2d.reshape(C, B, L).transpose(1, 0, 2)


def postnet_reference(audio, weights, biases, res_weights, kernel_size):
    """Pure-JAX reference (mirrors the PyTorch forward exactly)."""
    K = kernel_size
    for i in range(len(weights)):
        left_pad = (K - 1) // 2
        right_pad = (K - 1) - left_pad
        if i % 2 == 1:
            left_pad, right_pad = right_pad, left_pad
        x_pad = jnp.pad(audio, ((0, 0), (0, 0), (left_pad, right_pad)))
        y = lax.conv_general_dilated(
            x_pad, weights[i], window_strides=(1,), padding="VALID",
            dimension_numbers=("NCH", "OIH", "NCH"),
            precision=lax.Precision.HIGHEST)
        y = y + biases[i][None, :, None]
        audio = audio + res_weights[i] * jnp.tanh(y)
    return audio


if __name__ == "__main__":
    # Small synthetic config (equal channel counts so the residual add is valid,
    # exactly as the PyTorch module requires for its in-place +=).
    B = 2
    n_in_channels = n_out_channels = n_channels = 8
    L = 64                 # B*L = 128 -> lane-dense matmul N dim
    n_layers = 3
    kernel_size = 8

    key = jax.random.PRNGKey(0)
    k_audio, *k_layers = jax.random.split(key, 1 + 2 * n_layers)

    audio = jax.random.normal(k_audio, (B, n_in_channels, L), jnp.float32)

    weights, biases = [], []
    for i in range(n_layers):
        c_in = n_in_channels if i == 0 else n_channels
        c_out = n_out_channels if i + 1 == n_layers else n_channels
        fan_in = c_in * kernel_size
        bound = 1.0 / (fan_in ** 0.5)
        w = jax.random.uniform(k_layers[2 * i], (c_out, c_in, kernel_size),
                               jnp.float32, -bound, bound)
        b = jax.random.uniform(k_layers[2 * i + 1], (c_out,),
                               jnp.float32, -bound, bound)
        weights.append(w)
        biases.append(b)
    res_weights = jnp.ones((n_layers,), jnp.float32) * 0.01

    ref = jax.block_until_ready(
        postnet_reference(audio, weights, biases, res_weights, kernel_size))

    # f32 matmul path: tight check against the pure-JAX reference.
    run_f32 = jax.jit(functools.partial(
        postnet_forward, kernel_size=kernel_size, compute_dtype=jnp.float32))
    out_f32 = jax.block_until_ready(run_f32(audio, weights, biases, res_weights))
    assert out_f32.shape == (B, n_out_channels, L)
    assert jnp.allclose(out_f32, ref, atol=1e-5, rtol=1e-5), "f32 mismatch vs reference"

    # bf16 matmul path (recommended on v6e/v7x): f32 accumulate, looser tolerance.
    run_bf16 = jax.jit(functools.partial(
        postnet_forward, kernel_size=kernel_size, compute_dtype=jnp.bfloat16))
    out_bf16 = jax.block_until_ready(run_bf16(audio, weights, biases, res_weights))
    assert out_bf16.shape == (B, n_out_channels, L)
    assert jnp.allclose(out_bf16, ref, atol=2e-3, rtol=2e-3), "bf16 mismatch vs reference"

    print("KERNEL_OK")
</pallas_src>

<mosaic_0001>
module attributes {stable_mosaic.version = 11 : i64} {
  func.func @_postnet_fused_kernel(%arg0: i32, %arg1: memref<8x128xf32, #tpu.memory_space<vmem>>, %arg2: memref<1x8x64xf32, #tpu.memory_space<vmem>>, %arg3: memref<1x8x1xf32, #tpu.memory_space<vmem>>, %arg4: memref<3xf32, #tpu.memory_space<smem>>, %arg5: memref<8x128xf32, #tpu.memory_space<vmem>>, %arg6: memref<8x128xf32, #tpu.memory_space<vmem>>, %arg7: memref<8x142xf32, #tpu.memory_space<vmem>>, %arg8: memref<64x128xf32, #tpu.memory_space<vmem>>) attributes {dimension_semantics = [#tpu.dimension_semantics<arbitrary>], iteration_bounds = array<i64: 3>, scalar_prefetch = 0 : i64, scratch_operands = 3 : i64, tpu.core_type = #tpu.core_type<tc>, window_params = [{pipeline_mode = #tpu.pipeline_mode<synchronous>, transform_indices = @transform_0, window_bounds = array<i64: 8, 128>}, {transform_indices = @transform_1, window_bounds = array<i64: 1, 8, 64>}, {transform_indices = @transform_2, window_bounds = array<i64: 1, 8, 1>}, {transform_indices = @transform_3, window_bounds = array<i64: 3>}, {pipeline_mode = #tpu.pipeline_mode<synchronous>, transform_indices = @transform_4, window_bounds = array<i64: 8, 128>}]} {
    %c0_i32 = arith.constant 0 : i32
    %0 = arith.cmpi eq, %arg0, %c0_i32 : i32
    %1 = arith.extui %0 : i1 to i32
    %c0_i32_0 = arith.constant 0 : i32
    %2 = arith.cmpi ne, %1, %c0_i32_0 : i32
    scf.if %2 {
      %c0_74 = arith.constant 0 : index
      %c0_75 = arith.constant 0 : index
      %81 = vector.load %arg1[%c0_74, %c0_75] : memref<8x128xf32, #tpu.memory_space<vmem>>, vector<8x128xf32>
      %c0_76 = arith.constant 0 : index
      %c0_77 = arith.constant 0 : index
      %82 = vector.load %arg6[%c0_76, %c0_77] : memref<8x128xf32, #tpu.memory_space<vmem>>, vector<8x128xf32>
      tpu.vector_store %arg6[%c0_76, %c0_77], %81 {strides = array<i32>} : memref<8x128xf32, #tpu.memory_space<vmem>>, vector<8x128xf32>,
    } else {
    }
    %cst = arith.constant 0.000000e+00 : f32
    %3 = vector.broadcast %cst : f32 to vector<8x142xf32>
    %c0 = arith.constant 0 : index
    %c0_1 = arith.constant 0 : index
    %4 = vector.load %arg7[%c0, %c0_1] : memref<8x142xf32, #tpu.memory_space<vmem>>, vector<8x142xf32>
    tpu.vector_store %arg7[%c0, %c0_1], %3 {strides = array<i32>} : memref<8x142xf32, #tpu.memory_space<vmem>>, vector<8x142xf32>,
    %c2_i32 = arith.constant 2 : i32
    %c0_i32_2 = arith.constant 0 : i32
    %5 = arith.cmpi eq, %c2_i32, %c0_i32_2 : i32
    %c1_i32 = arith.constant 1 : i32
    %6 = arith.select %5, %c1_i32, %c2_i32 : i32
    %7 = arith.remsi %arg0, %6 : i32
    %c0_i32_3 = arith.constant 0 : i32
    %8 = arith.cmpi ne, %7, %c0_i32_3 : i32
    %c0_i32_4 = arith.constant 0 : i32
    %9 = arith.cmpi slt, %7, %c0_i32_4 : i32
    %c0_i32_5 = arith.constant 0 : i32
    %10 = arith.cmpi slt, %6, %c0_i32_5 : i32
    %11 = arith.xori %9, %10 : i1
    %12 = arith.andi %11, %8 : i1
    %13 = arith.addi %7, %6 : i32
    %14 = arith.select %12, %13, %7 : i32
    %c0_i32_6 = arith.constant 0 : i32
    %15 = arith.cmpi eq, %14, %c0_i32_6 : i32
    %16 = arith.extui %15 : i1 to i32
    %c0_i32_7 = arith.constant 0 : i32
    %17 = arith.cmpi ne, %16, %c0_i32_7 : i32
    scf.if %17 {
      %c0_74 = arith.constant 0 : index
      %c0_75 = arith.constant 0 : index
      %81 = vector.load %arg6[%c0_74, %c0_75] : memref<8x128xf32, #tpu.memory_space<vmem>>, vector<8x64xf32>
      %c0_76 = arith.constant 0 : index
      %c3_77 = arith.constant 3 : index
      %82 = vector.load %arg7[%c0_76, %c3_77] : memref<8x142xf32, #tpu.memory_space<vmem>>, vector<8x64xf32>
      tpu.vector_store %arg7[%c0_76, %c3_77], %81 {strides = array<i32>} : memref<8x142xf32, #tpu.memory_space<vmem>>, vector<8x64xf32>,
      %c0_78 = arith.constant 0 : index
      %c64_79 = arith.constant 64 : index
      %83 = vector.load %arg6[%c0_78, %c64_79] : memref<8x128xf32, #tpu.memory_space<vmem>>, vector<8x64xf32>
      %c0_80 = arith.constant 0 : index
      %c74_81 = arith.constant 74 : index
      %84 = vector.load %arg7[%c0_80, %c74_81] : memref<8x142xf32, #tpu.memory_space<vmem>>, vector<8x64xf32>
      tpu.vector_store %arg7[%c0_80, %c74_81], %83 {strides = array<i32>} : memref<8x142xf32, #tpu.memory_space<vmem>>, vector<8x64xf32>,
    } else {
    }
    %c2_i32_8 = arith.constant 2 : i32
    %c0_i32_9 = arith.constant 0 : i32
    %18 = arith.cmpi eq, %c2_i32_8, %c0_i32_9 : i32
    %c1_i32_10 = arith.constant 1 : i32
    %19 = arith.select %18, %c1_i32_10, %c2_i32_8 : i32
    %20 = arith.remsi %arg0, %19 : i32
    %c0_i32_11 = arith.constant 0 : i32
    %21 = arith.cmpi ne, %20, %c0_i32_11 : i32
    %c0_i32_12 = arith.constant 0 : i32
    %22 = arith.cmpi slt, %20, %c0_i32_12 : i32
    %c0_i32_13 = arith.constant 0 : i32
    %23 = arith.cmpi slt, %19, %c0_i32_13 : i32
    %24 = arith.xori %22, %23 : i1
    %25 = arith.andi %24, %21 : i1
    %26 = arith.addi %20, %19 : i32
    %27 = arith.select %25, %26, %20 : i32
    %c1_i32_14 = arith.constant 1 : i32
    %28 = arith.cmpi eq, %27, %c1_i32_14 : i32
    %29 = arith.extui %28 : i1 to i32
    %c0_i32_15 = arith.constant 0 : i32
    %30 = arith.cmpi ne, %29, %c0_i32_15 : i32
    scf.if %30 {
      %c0_74 = arith.constant 0 : index
      %c0_75 = arith.constant 0 : index
      %81 = vector.load %arg6[%c0_74, %c0_75] : memref<8x128xf32, #tpu.memory_space<vmem>>, vector<8x64xf32>
      %c0_76 = arith.constant 0 : index
      %c4_77 = arith.constant 4 : index
      %82 = vector.load %arg7[%c0_76, %c4_77] : memref<8x142xf32, #tpu.memory_space<vmem>>, vector<8x64xf32>
      tpu.vector_store %arg7[%c0_76, %c4_77], %81 {strides = array<i32>} : memref<8x142xf32, #tpu.memory_space<vmem>>, vector<8x64xf32>,
      %c0_78 = arith.constant 0 : index
      %c64_79 = arith.constant 64 : index
      %83 = vector.load %arg6[%c0_78, %c64_79] : memref<8x128xf32, #tpu.memory_space<vmem>>, vector<8x64xf32>
      %c0_80 = arith.constant 0 : index
      %c75_81 = arith.constant 75 : index
      %84 = vector.load %arg7[%c0_80, %c75_81] : memref<8x142xf32, #tpu.memory_space<vmem>>, vector<8x64xf32>
      tpu.vector_store %arg7[%c0_80, %c75_81], %83 {strides = array<i32>} : memref<8x142xf32, #tpu.memory_space<vmem>>, vector<8x64xf32>,
    } else {
    }
    %c0_16 = arith.constant 0 : index
    %c0_17 = arith.constant 0 : index
    %31 = vector.load %arg7[%c0_16, %c0_17] : memref<8x142xf32, #tpu.memory_space<vmem>>, vector<8x64xf32>
    %c0_18 = arith.constant 0 : index
    %c0_19 = arith.constant 0 : index
    %32 = vector.load %arg8[%c0_18, %c0_19] : memref<64x128xf32, #tpu.memory_space<vmem>>, vector<8x64xf32>
    tpu.vector_store %arg8[%c0_18, %c0_19], %31 {strides = array<i32>} : memref<64x128xf32, #tpu.memory_space<vmem>>, vector<8x64xf32>,
    %c0_20 = arith.constant 0 : index
    %c71 = arith.constant 71 : index
    %33 = vector.load %arg7[%c0_20, %c71] : memref<8x142xf32, #tpu.memory_space<vmem>>, vector<8x64xf32>
    %c0_21 = arith.constant 0 : index
    %c64 = arith.constant 64 : index
    %34 = vector.load %arg8[%c0_21, %c64] : memref<64x128xf32, #tpu.memory_space<vmem>>, vector<8x64xf32>
    tpu.vector_store %arg8[%c0_21, %c64], %33 {strides = array<i32>} : memref<64x128xf32, #tpu.memory_space<vmem>>, vector<8x64xf32>,
    %c0_22 = arith.constant 0 : index
    %c1 = arith.constant 1 : index
    %35 = vector.load %arg7[%c0_22, %c1] : memref<8x142xf32, #tpu.memory_space<vmem>>, vector<8x64xf32>
    %c8 = arith.constant 8 : index
    %c0_23 = arith.constant 0 : index
    %36 = vector.load %arg8[%c8, %c0_23] : memref<64x128xf32, #tpu.memory_space<vmem>>, vector<8x64xf32>
    tpu.vector_store %arg8[%c8, %c0_23], %35 {strides = array<i32>} : memref<64x128xf32, #tpu.memory_space<vmem>>, vector<8x64xf32>,
    %c0_24 = arith.constant 0 : index
    %c72 = arith.constant 72 : index
    %37 = vector.load %arg7[%c0_24, %c72] : memref<8x142xf32, #tpu.memory_space<vmem>>, vector<8x64xf32>
    %c8_25 = arith.constant 8 : index
    %c64_26 = arith.constant 64 : index
    %38 = vector.load %arg8[%c8_25, %c64_26] : memref<64x128xf32, #tpu.memory_space<vmem>>, vector<8x64xf32>
    tpu.vector_store %arg8[%c8_25, %c64_26], %37 {strides = array<i32>} : memref<64x128xf32, #tpu.memory_space<vmem>>, vector<8x64xf32>,
    %c0_27 = arith.constant 0 : index
    %c2 = arith.constant 2 : index
    %39 = vector.load %arg7[%c0_27, %c2] : memref<8x142xf32, #tpu.memory_space<vmem>>, vector<8x64xf32>
    %c16 = arith.constant 16 : index
    %c0_28 = arith.constant 0 : index
    %40 = vector.load %arg8[%c16, %c0_28] : memref<64x128xf32, #tpu.memory_space<vmem>>, vector<8x64xf32>
    tpu.vector_store %arg8[%c16, %c0_28], %39 {strides = array<i32>} : memref<64x128xf32, #tpu.memory_space<vmem>>, vector<8x64xf32>,
    %c0_29 = arith.constant 0 : index
    %c73 = arith.constant 73 : index
    %41 = vector.load %arg7[%c0_29, %c73] : memref<8x142xf32, #tpu.memory_space<vmem>>, vector<8x64xf32>
    %c16_30 = arith.constant 16 : index
    %c64_31 = arith.constant 64 : index
    %42 = vector.load %arg8[%c16_30, %c64_31] : memref<64x128xf32, #tpu.memory_space<vmem>>, vector<8x64xf32>
    tpu.vector_store %arg8[%c16_30, %c64_31], %41 {strides = array<i32>} : memref<64x128xf32, #tpu.memory_space<vmem>>, vector<8x64xf32>,
    %c0_32 = arith.constant 0 : index
    %c3 = arith.constant 3 : index
    %43 = vector.load %arg7[%c0_32, %c3] : memref<8x142xf32, #tpu.memory_space<vmem>>, vector<8x64xf32>
    %c24 = arith.constant 24 : index
    %c0_33 = arith.constant 0 : index
    %44 = vector.load %arg8[%c24, %c0_33] : memref<64x128xf32, #tpu.memory_space<vmem>>, vector<8x64xf32>
    tpu.vector_store %arg8[%c24, %c0_33], %43 {strides = array<i32>} : memref<64x128xf32, #tpu.memory_space<vmem>>, vector<8x64xf32>,
    %c0_34 = arith.constant 0 : index
    %c74 = arith.constant 74 : index
    %45 = vector.load %arg7[%c0_34, %c74] : memref<8x142xf32, #tpu.memory_space<vmem>>, vector<8x64xf32>
    %c24_35 = arith.constant 24 : index
    %c64_36 = arith.constant 64 : index
    %46 = vector.load %arg8[%c24_35, %c64_36] : memref<64x128xf32, #tpu.memory_space<vmem>>, vector<8x64xf32>
    tpu.vector_store %arg8[%c24_35, %c64_36], %45 {strides = array<i32>} : memref<64x128xf32, #tpu.memory_space<vmem>>, vector<8x64xf32>,
    %c0_37 = arith.constant 0 : index
    %c4 = arith.constant 4 : index
    %47 = vector.load %arg7[%c0_37, %c4] : memref<8x142xf32, #tpu.memory_space<vmem>>, vector<8x64xf32>
    %c32 = arith.constant 32 : index
    %c0_38 = arith.constant 0 : index
    %48 = vector.load %arg8[%c32, %c0_38] : memref<64x128xf32, #tpu.memory_space<vmem>>, vector<8x64xf32>
    tpu.vector_store %arg8[%c32, %c0_38], %47 {strides = array<i32>} : memref<64x128xf32, #tpu.memory_space<vmem>>, vector<8x64xf32>,
    %c0_39 = arith.constant 0 : index
    %c75 = arith.constant 75 : index
    %49 = vector.load %arg7[%c0_39, %c75] : memref<8x142xf32, #tpu.memory_space<vmem>>, vector<8x64xf32>
    %c32_40 = arith.constant 32 : index
    %c64_41 = arith.constant 64 : index
    %50 = vector.load %arg8[%c32_40, %c64_41] : memref<64x128xf32, #tpu.memory_space<vmem>>, vector<8x64xf32>
    tpu.vector_store %arg8[%c32_40, %c64_41], %49 {strides = array<i32>} : memref<64x128xf32, #tpu.memory_space<vmem>>, vector<8x64xf32>,
    %c0_42 = arith.constant 0 : index
    %c5 = arith.constant 5 : index
    %51 = vector.load %arg7[%c0_42, %c5] : memref<8x142xf32, #tpu.memory_space<vmem>>, vector<8x64xf32>
    %c40 = arith.constant 40 : index
    %c0_43 = arith.constant 0 : index
    %52 = vector.load %arg8[%c40, %c0_43] : memref<64x128xf32, #tpu.memory_space<vmem>>, vector<8x64xf32>
    tpu.vector_store %arg8[%c40, %c0_43], %51 {strides = array<i32>} : memref<64x128xf32, #tpu.memory_space<vmem>>, vector<8x64xf32>,
    %c0_44 = arith.constant 0 : index
    %c76 = arith.constant 76 : index
    %53 = vector.load %arg7[%c0_44, %c76] : memref<8x142xf32, #tpu.memory_space<vmem>>, vector<8x64xf32>
    %c40_45 = arith.constant 40 : index
    %c64_46 = arith.constant 64 : index
    %54 = vector.load %arg8[%c40_45, %c64_46] : memref<64x128xf32, #tpu.memory_space<vmem>>, vector<8x64xf32>
    tpu.vector_store %arg8[%c40_45, %c64_46], %53 {strides = array<i32>} : memref<64x128xf32, #tpu.memory_space<vmem>>, vector<8x64xf32>,
    %c0_47 = arith.constant 0 : index
    %c6 = arith.constant 6 : index
    %55 = vector.load %arg7[%c0_47, %c6] : memref<8x142xf32, #tpu.memory_space<vmem>>, vector<8x64xf32>
    %c48 = arith.constant 48 : index
    %c0_48 = arith.constant 0 : index
    %56 = vector.load %arg8[%c48, %c0_48] : memref<64x128xf32, #tpu.memory_space<vmem>>, vector<8x64xf32>
    tpu.vector_store %arg8[%c48, %c0_48], %55 {strides = array<i32>} : memref<64x128xf32, #tpu.memory_space<vmem>>, vector<8x64xf32>,
    %c0_49 = arith.constant 0 : index
    %c77 = arith.constant 77 : index
    %57 = vector.load %arg7[%c0_49, %c77] : memref<8x142xf32, #tpu.memory_space<vmem>>, vector<8x64xf32>
    %c48_50 = arith.constant 48 : index
    %c64_51 = arith.constant 64 : index
    %58 = vector.load %arg8[%c48_50, %c64_51] : memref<64x128xf32, #tpu.memory_space<vmem>>, vector<8x64xf32>
    tpu.vector_store %arg8[%c48_50, %c64_51], %57 {strides = array<i32>} : memref<64x128xf32, #tpu.memory_space<vmem>>, vector<8x64xf32>,
    %c0_52 = arith.constant 0 : index
    %c7 = arith.constant 7 : index
    %59 = vector.load %arg7[%c0_52, %c7] : memref<8x142xf32, #tpu.memory_space<vmem>>, vector<8x64xf32>
    %c56 = arith.constant 56 : index
    %c0_53 = arith.constant 0 : index
    %60 = vector.load %arg8[%c56, %c0_53] : memref<64x128xf32, #tpu.memory_space<vmem>>, vector<8x64xf32>
    tpu.vector_store %arg8[%c56, %c0_53], %59 {strides = array<i32>} : memref<64x128xf32, #tpu.memory_space<vmem>>, vector<8x64xf32>,
    %c0_54 = arith.constant 0 : index
    %c78 = arith.constant 78 : index
    %61 = vector.load %arg7[%c0_54, %c78] : memref<8x142xf32, #tpu.memory_space<vmem>>, vector<8x64xf32>
    %c56_55 = arith.constant 56 : index
    %c64_56 = arith.constant 64 : index
    %62 = vector.load %arg8[%c56_55, %c64_56] : memref<64x128xf32, #tpu.memory_space<vmem>>, vector<8x64xf32>
    tpu.vector_store %arg8[%c56_55, %c64_56], %61 {strides = array<i32>} : memref<64x128xf32, #tpu.memory_space<vmem>>, vector<8x64xf32>,
    %c0_57 = arith.constant 0 : index
    %c0_58 = arith.constant 0 : index
    %c0_59 = arith.constant 0 : index
    %63 = vector.load %arg2[%c0_57, %c0_58, %c0_59] : memref<1x8x64xf32, #tpu.memory_space<vmem>>, vector<1x8x64xf32>
    %64 = vector.shape_cast %63 : vector<1x8x64xf32> to vector<8x64xf32>
    %c0_60 = arith.constant 0 : index
    %c0_61 = arith.constant 0 : index
    %65 = vector.load %arg8[%c0_60, %c0_61] : memref<64x128xf32, #tpu.memory_space<vmem>>, vector<64x128xf32>
    %cst_62 = arith.constant dense<0.000000e+00> : vector<8x128xf32>
    %66 = tpu.matmul %64, %65, %cst_62 {dimension_numbers = #tpu.dot_dimension_numbers<[1], [0], [0], [1], [0, 0, 1, 1], [], []>, precision = #tpu.contract_precision<fp32>} : vector<8x64xf32>, vector<64x128xf32>, vector<8x128xf32> -> vector<8x128xf32>
    %c0_63 = arith.constant 0 : index
    %c0_64 = arith.constant 0 : index
    %c0_65 = arith.constant 0 : index
    %67 = vector.load %arg3[%c0_63, %c0_64, %c0_65] : memref<1x8x1xf32, #tpu.memory_space<vmem>>, vector<1x8x1xf32>
    %68 = vector.shape_cast %67 : vector<1x8x1xf32> to vector<8x1xf32>
    %69 = vector.broadcast %68 : vector<8x1xf32> to vector<8x128xf32>
    %70 = arith.addf %66, %69 : vector<8x128xf32>
    %c0_66 = arith.constant 0 : index
    %c0_67 = arith.constant 0 : index
    %71 = vector.load %arg6[%c0_66, %c0_67] : memref<8x128xf32, #tpu.memory_space<vmem>>, vector<8x128xf32>
    %72 = arith.index_cast %arg0 : i32 to index
    %73 = memref.load %arg4[%72] : memref<3xf32, #tpu.memory_space<smem>>
    %74 = math.tanh %70 : vector<8x128xf32>
    %75 = vector.broadcast %73 : f32 to vector<8x128xf32>
    %76 = arith.mulf %75, %74 : vector<8x128xf32>
    %77 = arith.addf %71, %76 : vector<8x128xf32>
    %c0_68 = arith.constant 0 : index
    %c0_69 = arith.constant 0 : index
    %78 = vector.load %arg6[%c0_68, %c0_69] : memref<8x128xf32, #tpu.memory_space<vmem>>, vector<8x128xf32>
    tpu.vector_store %arg6[%c0_68, %c0_69], %77 {strides = array<i32>} : memref<8x128xf32, #tpu.memory_space<vmem>>, vector<8x128xf32>,
    %c0_70 = arith.constant 0 : index
    %c0_71 = arith.constant 0 : index
    %79 = vector.load %arg6[%c0_70, %c0_71] : memref<8x128xf32, #tpu.memory_space<vmem>>, vector<8x128xf32>
    %c0_72 = arith.constant 0 : index
    %c0_73 = arith.constant 0 : index
    %80 = vector.load %arg5[%c0_72, %c0_73] : memref<8x128xf32, #tpu.memory_space<vmem>>, vector<8x128xf32>
    tpu.vector_store %arg5[%c0_72, %c0_73], %79 {strides = array<i32>} : memref<8x128xf32, #tpu.memory_space<vmem>>, vector<8x128xf32>,
    return
  }
  func.func @transform_0(%arg0: i32) -> (i32, i32) {
    %c0_i32 = arith.constant 0 : i32
    %c0_i32_0 = arith.constant 0 : i32
    %c0_i32_1 = arith.constant 0 : i32
    return %c0_i32, %c0_i32_0 : i32, i32
  }
  func.func @transform_1(%arg0: i32) -> (i32, i32, i32) {
    %c0_i32 = arith.constant 0 : i32
    %c0_i32_0 = arith.constant 0 : i32
    %c0_i32_1 = arith.constant 0 : i32
    return %arg0, %c0_i32, %c0_i32_0 : i32, i32, i32
  }
  func.func @transform_2(%arg0: i32) -> (i32, i32, i32) {
    %c0_i32 = arith.constant 0 : i32
    %c0_i32_0 = arith.constant 0 : i32
    %c0_i32_1 = arith.constant 0 : i32
    return %arg0, %c0_i32, %c0_i32_0 : i32, i32, i32
  }
  func.func @transform_3(%arg0: i32) -> i32 {
    %c0_i32 = arith.constant 0 : i32
    %c0_i32_0 = arith.constant 0 : i32
    return %c0_i32 : i32
  }
  func.func @transform_4(%arg0: i32) -> (i32, i32) {
    %c0_i32 = arith.constant 0 : i32
    %c0_i32_0 = arith.constant 0 : i32
    %c0_i32_1 = arith.constant 0 : i32
    return %c0_i32, %c0_i32_0 : i32, i32
  }
}

</mosaic_0001>

<bundles_post_ra>
// kernel: postnet_forward.1
= control target key start
LH: loop header
LB: loop body
LE: loop exit
PB: predicated region body
PF: predicated region fallthrough
CT: control target
= control target key end

     0   :  { %9 = vsyncpa [#allocation6], 0  ;;  %s1416_s15 = smov 0   ;;  %s1603_s0 = inlined_call_operand.vmem [shape: f32[8,128], index: 0, kind: input, shape index: {}, may-alias: {0,4}]   ;;  %s1604_s1 = inlined_call_operand.vmem [shape: f32[3,8,64], index: 1, kind: input, shape index: {}]   ;;  %s1605_s2 = inlined_call_operand.vmem [shape: f32[3,8,1], index: 2, kind: input, shape index: {}]   ;;  %s1606_s3 = inlined_call_operand.vmem [shape: f32[3], index: 3, kind: input, shape index: {}]   ;;  %s1607_s4 = inlined_call_operand.vmem [shape: f32[8,128], index: 4, kind: output, shape index: {}, may-alias: {0,4}]  }
   0x1 LB: > { %s1422_s16 = sadd.s32 4294967295, %s1366_s15   ;;  %p1031_p0 = scmp.ge.s32.totalorder %s1366_s15, 1  ;;  %s1366_s15 = sphi %s1416_s15, %s15_s15  }
   0x2   : > { %p135_p1 = scmp.lt.s32.totalorder %s1366_s15, 4  ;;  %s151_s19 = sshll.u32 %s1606_s3, 4  ;;  %s152_s19 = int_to_ptr.vmem [resolvable:$true] %s151_s19 }
   0x3   : > { %p1304_p4 = scmp.eq.s32.totalorder %s1422_s16, 0  ;;  %s1341_s21 = scalar_lea.vmem %s152_s19, 16 }
   0x4   : > { %p1430_p3 = pnand %p1031_p0, %p135_p1  ;;  %p1342_p7 = scmp.ne.s32.totalorder %s152_s19, %s1341_s21 }
   0x5   : > { %p1349_p11 = scmp.lt.s32.totalorder %s152_s19, %s152_s19  ;;  %p1350_p12 = scmp.lt.s32.totalorder %s1341_s21, %s1341_s21 }
   0x6   : > { %p1300_p5 = pneg %p1430_p3 }
   0x7   : > { %p1351_p13 = por %p1350_p12, %p1349_p11 }
   0x8   : > { %p1301_p6 = pnand %p1304_p4, %p1300_p5 }
   0xa   : > { %p1343_p8 = pneg %p1301_p6 }
   0xc   : > { %p1344_p9 = pnand %p1343_p8, %p1342_p7 }
   0xe   : > { %p1345_p10 = pneg %p1344_p9 }
  0x10   : > { %p1352_p2 = pnand %p1351_p13, %p1345_p10 }
  0x12   : > { %1355 = shalt.err (!%p1352_p2)
}
  0x13   : > { %s1368_s22 = smov [#allocation5]   ;;  %178 = sbr.rel (%p1430_p3) target bundleno = 738 (0x2e2), region = 36 }
  0x14   : > { %1303 = dma.vmem_to_smem (!%p1301_p6), %s152_s19, 16, %s1368_s22, [#allocation6]  }
  0x1a   : > { %1361 = dma.done.wait (%p1304_p4), [#allocation6], 16  }
  0x1b   : > { %1363 = vsyncadd (%p1304_p4), [#allocation6], 4294967280 }
  0x1c   : > { %184 = sfence }
  0x1d   : > { %p203_p0 = scmp.lt.s32.totalorder %s1422_s16, 2  ;;  %p1609_p1 = scmp.ne.s32.totalorder %s1422_s16, 0 }
  0x1e   : > { %v215_v0 = vld [vmem:[%s1603_s0] sm:$0xff] (!%p1609_p1) }
  0x1f   : > { %s204_s23 = scalar_select %p203_p0, %s1422_s16, 2 }
  0x20   : > { %214 = sbr.rel (%p1609_p1) target bundleno = 39 (0x27), region = 44  ;;  %216 = vst [vmem:[#allocation2] sm:$0xff] (!%p1609_p1), %v215_v0 }
  0x21   : > { %s1036_s24 = sshll.u32 %s204_s23, 3 }
  0x22   : > { %s1450_s27 = scalar_lea.vmem %s1604_s1, %s1036_s24  ;;  %s1455_s30 = scalar_lea.vmem %s1605_s2, %s1036_s24 }
  0x27 PF: > { %vm218_vm0 = vcmask 113664   ;;  %p220_p2 = scmp.lt.s32.totalorder %s1422_s16, 0  ;;  %s221_s7 = ssub.s32 0, %s1422_s16  ;;  %v1369_v1 = vmov 0.0  }
  0x28   : > { %217 = vst [vmem:[#allocation3] sm:$0xff] %v1369_v1  ;;  %219 = vst.msk [vmem:[#allocation3 + $0x8] sm:$0xff] %vm218_vm0, %v1369_v1  ;;  %s1039_s8 = smin.u32 %s1422_s16, %s221_s7 }
  0x29   : > { %s223_s9 = sand.u32 1, %s1039_s8  }
  0x2a   : > { %s224_s10 = ssub.s32 0, %s223_s9 }
  0x2b   : > { %s1611_s10 = smov (!%p220_p2, %s224_s10), %s223_s9 }
  0x2c   : > { %p1041_p3 = scmp.lt.s32.totalorder %s1611_s10, 0  ;;  %s230_s11 = sadd.s32 2, %s1611_s10 }
  0x2e   : > { %s1613_s11 = smov (!%p1041_p3, %s230_s11), %s1611_s10 }
  0x2f   : > { %p1042_p4 = scmp.ne.s32.totalorder %s1613_s11, 0 }
  0x30   : > { %v236_v2 = vld [vmem:[#allocation2] sm:$0xff] (!%p1042_p4)  ;;  %s1370_s12 = smov (!%p1042_p4), 3   ;;  %s1371_s13 = smov (!%p1042_p4), 10   ;;  %vm241_vm1 = vcmask (!%p1042_p4), 547864   ;;  %vm248_vm2 = vcmask (!%p1042_p4), 1048144   ;;  %vm250_vm3 = vcmask (!%p1042_p4), 80896  }
  0x31   : > { %235 = sbr.rel (%p1042_p4) target bundleno = 170 (0xaa), region = 48  ;;  %238 = vrot.lane.b32.xlu0 (!%p1042_p4), %v236_v2, %s1370_s12 }
  0x35   : > { %245 = vrot.lane.b32.xlu0 (!%p1042_p4), %v236_v2, %s1371_s13 }
  0xa3   : > { %v239_v3 = vpop.permute.xlu0 %238 }
  0xa4   : > { %242 = vst.msk [vmem:[#allocation3] sm:$0xff] %vm241_vm1, %v239_v3 }
  0xa7   : > { %v246_v4 = vpop.permute.xlu0 %245 }
  0xa8   : > { %249 = vst.msk [vmem:[#allocation3] sm:$0xff] %vm248_vm2, %v246_v4 }
  0xa9   : > { %251 = vst.msk [vmem:[#allocation3 + $0x8] sm:$0xff] %vm250_vm3, %v246_v4 }
  0xaa PF: > { %p1043_p5 = scmp.ne.s32.totalorder %s1613_s11, 1 }
  0xab   : > { %v256_v5 = vld [vmem:[#allocation2] sm:$0xff] (!%p1043_p5)  ;;  %s1372_s14 = smov (!%p1043_p5), 4   ;;  %s1373_s17 = smov (!%p1043_p5), 11   ;;  %vm261_vm4 = vcmask (!%p1043_p5), 556064   ;;  %vm268_vm5 = vcmask (!%p1043_p5), 1048152   ;;  %vm270_vm6 = vcmask (!%p1043_p5), 89088  }
  0xac   : > { %255 = sbr.rel (%p1043_p5) target bundleno = 293 (0x125), region = 52  ;;  %258 = vrot.lane.b32.xlu0 (!%p1043_p5), %v256_v5, %s1372_s14 }
  0xb0   : > { %265 = vrot.lane.b32.xlu0 (!%p1043_p5), %v256_v5, %s1373_s17 }
 0x11e   : > { %v259_v6 = vpop.permute.xlu0 %258 }
 0x11f   : > { %262 = vst.msk [vmem:[#allocation3] sm:$0xff] %vm261_vm4, %v259_v6 }
 0x122   : > { %v266_v7 = vpop.permute.xlu0 %265 }
 0x123   : > { %269 = vst.msk [vmem:[#allocation3] sm:$0xff] %vm268_vm5, %v266_v7 }
 0x124   : > { %271 = vst.msk [vmem:[#allocation3 + $0x8] sm:$0xff] %vm270_vm6, %v266_v7 }
 0x125 PF: > { %vm273_vm7 = vcmask 523264   ;;  %s1374_s18 = smov 127   ;;  %s1375_s19 = smov 121   ;;  %v1377_v10 = vmov 0.0|0.0   ;;  %vm1389_vm8 = vmmov 0   ;;  %v423_v11 = vld [vmem:[%s1455_s30] sm:$0xff] }
 0x126   : > { %s1376_s20 = smov 120   ;;  %1214 = vmatprep.subr.bf16.mxu1 %v1377_v10  ;;  %1250 = vmatprep.subr.bf16.mxu0 %v1377_v10  ;;  %s1378_s21 = smov 126   ;;  %v1390_v12 = vmov 0   ;;  %vm283_vm9 = vcmask 990208   ;;  %vm286_vm10 = vcmask 1048064   ;;  %vm302_vm11 = vcmask 982016  }
 0x127   : > { %s1379_s22 = smov 119   ;;  %s1380_s23 = smov 118   ;;  %1116 = vmatprep.mubr.msk.f32.mxu1 %vm1389_vm8, %v1369_v1  ;;  %1173 = vmatprep.mubr.msk.f32.mxu0 %vm1389_vm8, %v1369_v1  ;;  %vm320_vm12 = vcmask 973824   ;;  %vm338_vm13 = vcmask 965632   ;;  %vm356_vm14 = vcmask 957440   ;;  %vm374_vm15 = vcmask 949248  }
 0x128   : > { %s1381_s24 = smov 125   ;;  %s1382_s25 = smov 124   ;;  %1337 = vset.pattern.permute.xlu1 %v1390_v12  ;;  %1338 = vset.pattern.permute.xlu0 %v1390_v12  ;;  %vm392_vm0 = vcmask 941056   ;;  %v414_v47 = vld [vmem:[%s1450_s27] sm:$0xff]  ;;  %vm410_vm1 = vcmask 932864  }
 0x129   : > { %s1383_s26 = smov 117   ;;  %s1384_s28 = smov 116   ;;  %v430_v51 = vsel %vm273_vm7, %v414_v47, 0 }
 0x12a   : > { %v288_v8 = vld [vmem:[#allocation3] sm:$0xff]  ;;  %s1385_s29 = smov 123   ;;  %s1386_s5 = smov 122   ;;  %v1506_v55 = vand.u32 4294901760, %v430_v51 }
 0x12b   : > { %290 = vrot.lane.b32.xlu1 %v288_v8, %s1374_s18  ;;  %279 = vrot.lane.b32.xlu0 %v288_v8, %s1375_s19  ;;  %274 = vst.msk [vmem:[#allocation4] sm:$0xff] %vm273_vm7, %v288_v8  ;;  %v276_v9 = vld [vmem:[#allocation3 + $0x8] sm:$0xff]  ;;  %s1387_s6 = smov 115   ;;  %s1388_s7 = smov 114  }
 0x12c   : > { %v1515_v0 = vsub.f32 %v430_v51, %v1506_v55  ;;  %s970_s27 = sld [smem:[#allocation5 + %s1422_s16]] }
 0x12e   : > { %v507_v4 = vand.u32 4294901760, %v1515_v0 }
 0x12f   : > { %298 = vrot.lane.b32.xlu1 %v288_v8, %s1376_s20  ;;  %281 = vrot.lane.b32.xlu0 %v276_v9, %s1375_s19 }
 0x133   : > { %308 = vrot.lane.b32.xlu1 %v288_v8, %s1378_s21  ;;  %300 = vrot.lane.b32.xlu0 %v276_v9, %s1376_s20 }
 0x137   : > { %318 = vrot.lane.b32.xlu1 %v276_v9, %s1379_s22  ;;  %316 = vrot.lane.b32.xlu0 %v288_v8, %s1379_s22 }
 0x13b   : > { %334 = vrot.lane.b32.xlu1 %v288_v8, %s1380_s23  ;;  %326 = vrot.lane.b32.xlu0 %v288_v8, %s1381_s24 }
 0x13f   : > { %344 = vrot.lane.b32.xlu1 %v288_v8, %s1382_s25  ;;  %336 = vrot.lane.b32.xlu0 %v276_v9, %s1380_s23 }
 0x143   : > { %354 = vrot.lane.b32.xlu1 %v276_v9, %s1383_s26  ;;  %352 = vrot.lane.b32.xlu0 %v288_v8, %s1383_s26 }
 0x147   : > { %370 = vrot.lane.b32.xlu1 %v288_v8, %s1384_s28  ;;  %362 = vrot.lane.b32.xlu0 %v288_v8, %s1385_s29 }
 0x14b   : > { %380 = vrot.lane.b32.xlu1 %v288_v8, %s1386_s5  ;;  %372 = vrot.lane.b32.xlu0 %v276_v9, %s1384_s28 }
 0x14f   : > { %390 = vrot.lane.b32.xlu1 %v276_v9, %s1387_s6  ;;  %388 = vrot.lane.b32.xlu0 %v288_v8, %s1387_s6 }
 0x153   : > { %398 = vrot.lane.b32.xlu0 %v288_v8, %s1375_s19  ;;  %406 = vrot.lane.b32.xlu1 %v288_v8, %s1388_s7 }
 0x157   : > { %408 = vrot.lane.b32.xlu0 %v276_v9, %s1388_s7  ;;  %426 = vperm.xlu1 %1337, %v423_v11  }
 0x19d   : > { %v291_v13 = vpop.permute.xlu1 %290  ;;  %v280_v14 = vpop.permute.xlu0 %279 }
 0x19e   : > { %293 = vst.msk [vmem:[#allocation4 + $0x8] sm:$0xff] %vm273_vm7, %v291_v13  ;;  %v508_v13 = vsub.f32 %v1515_v0, %v507_v4 }
 0x1a1   : > { %v299_v15 = vpop.permute.xlu1 %298  ;;  %v282_v16 = vpop.permute.xlu0 %281 }
 0x1a2   : > { %v284_v17 = vsel %vm283_vm9, %v280_v14, %v282_v16 }
 0x1a3   : > { %287 = vst.msk [vmem:[#allocation4] sm:$0xff] %vm286_vm10, %v284_v17 }
 0x1a5   : > { %v309_v18 = vpop.permute.xlu1 %308  ;;  %v301_v19 = vpop.permute.xlu0 %300 }
 0x1a6   : > { %311 = vst.msk [vmem:[#allocation4 + $0x10] sm:$0xff] %vm273_vm7, %v309_v18  ;;  %v303_v20 = vsel %vm302_vm11, %v299_v15, %v301_v19 }
 0x1a7   : > { %305 = vst.msk [vmem:[#allocation4 + $0x8] sm:$0xff] %vm286_vm10, %v303_v20 }
 0x1a9   : > { %v319_v21 = vpop.permute.xlu1 %318  ;;  %v317_v22 = vpop.permute.xlu0 %316 }
 0x1aa   : > { %v321_v23 = vsel %vm320_vm12, %v317_v22, %v319_v21  ;;  %v415_v24 = vld [vmem:[#allocation4] sm:$0xff] }
 0x1ab   : > { %323 = vst.msk [vmem:[#allocation4 + $0x10] sm:$0xff] %vm286_vm10, %v321_v23  ;;  %v433_v28 = vand.u32 4294901760, %v415_v24 }
 0x1ad   : > { %v335_v25 = vpop.permute.xlu1 %334  ;;  %v327_v26 = vpop.permute.xlu0 %326  ;;  %v1512_v62 = vsub.f32 %v415_v24, %v433_v28  ;;  %v509_v24 = vand.u32 4294901760, %v508_v13 }
 0x1ae   : > { %329 = vst.msk [vmem:[#allocation4 + $0x18] sm:$0xff] %vm273_vm7, %v327_v26  ;;  %v416_v27 = vld [vmem:[#allocation4 + $0x8] sm:$0xff] }
 0x1af   : > { %v436_v29 = vand.u32 4294901760, %v416_v27  ;;  %v518_v5 = vand.u32 4294901760, %v1512_v62 }
 0x1b1   : > { %v345_v30 = vpop.permute.xlu1 %344  ;;  %v337_v31 = vpop.permute.xlu0 %336  ;;  %v1484_v32 = vpack.c.bf16 %v436_v29, %v433_v28  ;;  %v1508_v59 = vsub.f32 %v416_v27, %v436_v29  ;;  %v519_v14 = vsub.f32 %v1512_v62, %v518_v5 }
 0x1b2   : > { %347 = vst.msk [vmem:[#allocation4 + $0x20] sm:$0xff] %vm273_vm7, %v345_v30  ;;  %v339_v33 = vsel %vm338_vm13, %v335_v25, %v337_v31  ;;  %v417_v37 = vld [vmem:[#allocation4 + $0x10] sm:$0xff] }
 0x1b3   : > { %341 = vst.msk [vmem:[#allocation4 + $0x18] sm:$0xff] %vm286_vm10, %v339_v33  ;;  %1216 = vmatpush3.bf16.msra.mxu1 %v1484_v32  ;;  %1252 = vmatpush3.bf16.msra.mxu0 %v1484_v32  ;;  %v439_v41 = vand.u32 4294901760, %v417_v37  ;;  %v525_v2 = vand.u32 4294901760, %v1508_v59  ;;  %v520_v26 = vand.u32 4294901760, %v519_v14  ;;  %v1239_v51 = vpack.c.bf16 %v1508_v59, %v1512_v62 }
 0x1b4   : > { %1217 = vmatprep.subr.bf16.mxu1 %v1377_v10  ;;  %1253 = vmatprep.subr.bf16.mxu0 %v1377_v10 }
 0x1b5   : > { %v355_v34 = vpop.permute.xlu1 %354  ;;  %v353_v35 = vpop.permute.xlu0 %352  ;;  %v1527_v6 = vsub.f32 %v417_v37, %v439_v41  ;;  %v526_v8 = vsub.f32 %v1508_v59, %v525_v2  ;;  %v1263_v29 = vpack.c.bf16 %v525_v2, %v518_v5 }
 0x1b6   : > { %v357_v36 = vsel %vm356_vm14, %v353_v35, %v355_v34 }
 0x1b7   : > { %359 = vst.msk [vmem:[#allocation4 + $0x20] sm:$0xff] %vm286_vm10, %v357_v36  ;;  %v532_v18 = vand.u32 4294901760, %v1527_v6  ;;  %v527_v19 = vand.u32 4294901760, %v526_v8 }
 0x1b9   : > { %v371_v38 = vpop.permute.xlu1 %370  ;;  %v363_v39 = vpop.permute.xlu0 %362  ;;  %v533_v27 = vsub.f32 %v1527_v6, %v532_v18  ;;  %v1227_v30 = vpack.c.bf16 %v527_v19, %v520_v26 }
 0x1ba   : > { %365 = vst.msk [vmem:[#allocation4 + $0x28] sm:$0xff] %vm273_vm7, %v363_v39  ;;  %v418_v40 = vld [vmem:[#allocation4 + $0x18] sm:$0xff] }
 0x1bb   : > { %v442_v42 = vand.u32 4294901760, %v418_v40  ;;  %v534_v35 = vand.u32 4294901760, %v533_v27 }
 0x1bd   : > { %v381_v43 = vpop.permute.xlu1 %380  ;;  %v373_v44 = vpop.permute.xlu0 %372  ;;  %v1494_v45 = vpack.c.bf16 %v442_v42, %v439_v41  ;;  %v1523_v3 = vsub.f32 %v418_v40, %v442_v42 }
 0x1be   : > { %383 = vst.msk [vmem:[#allocation4 + $0x30] sm:$0xff] %vm273_vm7, %v381_v43  ;;  %v375_v46 = vsel %vm374_vm15, %v371_v38, %v373_v44  ;;  %v419_v52 = vld [vmem:[#allocation4 + $0x20] sm:$0xff] }
 0x1bf   : > { %377 = vst.msk [vmem:[#allocation4 + $0x28] sm:$0xff] %vm286_vm10, %v375_v46  ;;  %1219 = vmatpush3.bf16.msra.mxu1 %v1494_v45  ;;  %1255 = vmatpush3.bf16.msra.mxu0 %v1494_v45  ;;  %v445_v57 = vand.u32 4294901760, %v419_v52  ;;  %v539_v11 = vand.u32 4294901760, %v1523_v3 }
 0x1c0   : > { %1220 = vmatprep.subr.bf16.mxu1 %v1377_v10  ;;  %1256 = vmatprep.subr.bf16.mxu0 %v1377_v10 }
 0x1c1   : > { %v391_v48 = vpop.permute.xlu1 %390  ;;  %v389_v49 = vpop.permute.xlu0 %388  ;;  %v1535_v15 = vsub.f32 %v419_v52, %v445_v57  ;;  %v540_v22 = vsub.f32 %v1523_v3, %v539_v11  ;;  %v1266_v39 = vpack.c.bf16 %v539_v11, %v532_v18  ;;  %v1242_v52 = vpack.c.bf16 %v1523_v3, %v1527_v6 }
 0x1c2   : > { %v393_v50 = vsel %vm392_vm0, %v389_v49, %v391_v48 }
 0x1c3   : > { %395 = vst.msk [vmem:[#allocation4 + $0x30] sm:$0xff] %vm286_vm10, %v393_v50  ;;  %v546_v28 = vand.u32 4294901760, %v1535_v15  ;;  %v541_v31 = vand.u32 4294901760, %v540_v22 }
 0x1c5   : > { %v399_v53 = vpop.permute.xlu0 %398  ;;  %v407_v56 = vpop.permute.xlu1 %406  ;;  %v547_v36 = vsub.f32 %v1535_v15, %v546_v28  ;;  %v1230_v38 = vpack.c.bf16 %v541_v31, %v534_v35 }
 0x1c6   : > { %401 = vst.msk [vmem:[#allocation4 + $0x38] sm:$0xff] %vm273_vm7, %v399_v53  ;;  %v420_v54 = vld [vmem:[#allocation4 + $0x28] sm:$0xff] }
 0x1c7   : > { %v448_v58 = vand.u32 4294901760, %v420_v54  ;;  %v548_v42 = vand.u32 4294901760, %v547_v36 }
 0x1c9   : > { %v409_v60 = vpop.permute.xlu0 %408  ;;  %v1510_v61 = vpack.c.bf16 %v448_v58, %v445_v57  ;;  %v1530_v9 = vsub.f32 %v420_v54, %v448_v58 }
 0x1ca   : > { %v411_v63 = vsel %vm410_vm1, %v407_v56, %v409_v60  ;;  %v421_v7 = vld [vmem:[#allocation4 + $0x30] sm:$0xff] }
 0x1cb   : > { %413 = vst.msk [vmem:[#allocation4 + $0x38] sm:$0xff] %vm286_vm10, %v411_v63  ;;  %1222 = vmatpush3.bf16.msra.mxu1 %v1510_v61  ;;  %1258 = vmatpush3.bf16.msra.mxu0 %v1510_v61  ;;  %v451_v16 = vand.u32 4294901760, %v421_v7  ;;  %v553_v23 = vand.u32 4294901760, %v1530_v9 }
 0x1cc   : > { %1223 = vmatprep.subr.bf16.mxu1 %v1377_v10  ;;  %1259 = vmatprep.subr.bf16.mxu0 %v1377_v10 }
 0x1cd   : > { %v1545_v25 = vsub.f32 %v421_v7, %v451_v16  ;;  %v554_v33 = vsub.f32 %v1530_v9, %v553_v23  ;;  %v1269_v46 = vpack.c.bf16 %v553_v23, %v546_v28 }
 0x1cf   : > { %v560_v37 = vand.u32 4294901760, %v1545_v25  ;;  %v555_v40 = vand.u32 4294901760, %v554_v33 }
 0x1d1   : > { %v561_v43 = vsub.f32 %v1545_v25, %v560_v37  ;;  %v1233_v44 = vpack.c.bf16 %v555_v40, %v548_v42 }
 0x1d2   : > { %v422_v12 = vld [vmem:[#allocation4 + $0x38] sm:$0xff] }
 0x1d3   : > { %v454_v17 = vand.u32 4294901760, %v422_v12  ;;  %v562_v48 = vand.u32 4294901760, %v561_v43 }
 0x1d5   : > { %v1538_v20 = vpack.c.bf16 %v454_v17, %v451_v16  ;;  %v1540_v21 = vsub.f32 %v422_v12, %v454_v17 }
 0x1d7   : > { %1225 = vmatpush3.bf16.msra.mxu1 %v1538_v20  ;;  %1261 = vmatpush3.bf16.msra.mxu0 %v1538_v20  ;;  %v567_v34 = vand.u32 4294901760, %v1540_v21 }
 0x1d8   : > { %1226 = vmatprep.subr.bf16.mxu1 %v1377_v10  ;;  %1262 = vmatprep.subr.bf16.mxu0 %v1377_v10 }
 0x1d9   : > { %v568_v41 = vsub.f32 %v1540_v21, %v567_v34  ;;  %v1272_v50 = vpack.c.bf16 %v567_v34, %v560_v37 }
 0x1da   : > { %1117 = vmatmul.mubr.f32.vlgmr.msra.gmra.mrb[0].mxu1 %v509_v24  ;;  %1174 = vmatmul.mubr.f32.vlgmr.msra.gmra.mrb[0].mxu0 %v507_v4 }
 0x1db   : > { %1228 = vmatpush3.bf16.msra.mxu1 %v1227_v30  ;;  %1264 = vmatpush3.bf16.msra.mxu0 %v1263_v29  ;;  %v569_v47 = vand.u32 4294901760, %v568_v41 }
 0x1dc   : > { %1229 = vmatprep.subr.bf16.mxu1 %v1377_v10  ;;  %1265 = vmatprep.subr.bf16.mxu0 %v1377_v10 }
 0x1dd   : > { %1135 = vmatprep.mubr.msk.f32.mxu1 %vm1389_vm8, %v1369_v1  ;;  %1192 = vmatprep.mubr.msk.f32.mxu0 %vm1389_vm8, %v1369_v1  ;;  %v1236_v49 = vpack.c.bf16 %v569_v47, %v562_v48 }
 0x1df   : > { %1231 = vmatpush3.bf16.msra.mxu1 %v1230_v38  ;;  %1267 = vmatpush3.bf16.msra.mxu0 %v1266_v39 }
 0x1e0   : > { %1232 = vmatprep.subr.bf16.mxu1 %v1377_v10  ;;  %1268 = vmatprep.subr.bf16.mxu0 %v1377_v10 }
 0x1e3   : > { %1234 = vmatpush3.bf16.msra.mxu1 %v1233_v44  ;;  %1270 = vmatpush3.bf16.msra.mxu0 %v1269_v46 }
 0x1e4   : > { %1235 = vmatprep.subr.bf16.mxu1 %v1377_v10  ;;  %1271 = vmatprep.subr.bf16.mxu0 %v1377_v10 }
 0x1e7   : > { %1237 = vmatpush3.bf16.msra.mxu1 %v1236_v49  ;;  %1273 = vmatpush3.bf16.msra.mxu0 %v1272_v50 }
 0x1e8   : > { %1238 = vmatprep.subr.bf16.mxu1 %v1377_v10  ;;  %1274 = vmatprep.subr.bf16.mxu0 %v1377_v10 }
 0x1ea   : > { %1136 = vmatmul.mubr.f32.vlgmr.msra.gmra.mrb[0].mxu1 %v1506_v55  ;;  %1193 = vmatmul.mubr.f32.vlgmr.msra.gmra.mrb[0].mxu0 %v1506_v55 }
 0x1eb   : > { %1240 = vmatpush3.bf16.msra.mxu1 %v1239_v51  ;;  %1276 = vmatpush3.bf16.msra.mxu0 %v1484_v32  ;;  %v1245_v32 = vpack.c.bf16 %v1530_v9, %v1535_v15 }
 0x1ec   : > { %1241 = vmatprep.subr.bf16.mxu1 %v1377_v10  ;;  %1277 = vmatprep.subr.bf16.mxu0 %v1377_v10 }
 0x1ed   : > { %1154 = vmatprep.mubr.msk.f32.mxu1 %vm1389_vm8, %v1369_v1  ;;  %1211 = vmatprep.mubr.msk.f32.mxu0 %vm1389_vm8, %v1369_v1  ;;  %v1248_v1 = vpack.c.bf16 %v1540_v21, %v1545_v25 }
 0x1ef   : > { %1243 = vmatpush3.bf16.msra.mxu1 %v1242_v52  ;;  %1279 = vmatpush3.bf16.msra.mxu0 %v1494_v45  ;;  %v427_v45 = vpop.permute.xlu1 %426 }
 0x1f0   : > { %1244 = vmatprep.subr.bf16.mxu1 %v1377_v10  ;;  %1280 = vmatprep.subr.bf16.mxu0 %v1377_v10 }
 0x1f3   : > { %1246 = vmatpush3.bf16.msra.mxu1 %v1245_v32  ;;  %1282 = vmatpush3.bf16.msra.mxu0 %v1510_v61  ;;  %v969_v61 = vld [vmem:[#allocation2] sm:$0xff] }
 0x1f4   : > { %1247 = vmatprep.subr.bf16.mxu1 %v1377_v10  ;;  %1283 = vmatprep.subr.bf16.mxu0 %v1377_v10  ;;  %v972_v10 = vstv %s970_s27 }
 0x1f7   : > { %1249 = vmatpush3.bf16.msra.mxu1 %v1248_v1  ;;  %1285 = vmatpush3.bf16.msra.mxu0 %v1538_v20 }
 0x1fa   : > { %1155 = vmatmul.mubr.f32.vlgmr.msra.gmra.mrb[0].mxu1 %v1515_v0  ;;  %1212 = vmatmul.mubr.f32.vlgmr.msra.gmra.mrb[0].mxu0 %v1506_v55 }
 0x2cd   : > { %v710_v53 = vpop.f32.mrb[0].mxu1  ;;  %v965_v54 = vpop.f32.mrb[0].mxu0 }
 0x2ce   : > { %v1286_v56 = vadd.f32 %v710_v53, %v427_v45  ;;  %v1156_v57 = vpop.f32.mrb[1].mxu1  ;;  %v1213_v58 = vpop.f32.mrb[1].mxu0 }
 0x2d0   : > { %v1287_v59 = vadd.f32 %v1286_v56, %v965_v54 }
 0x2d2   : > { %1339 = vtanh.f32 %v1287_v59 }
 0x2dc   : > { %v1340_v60 = vpop.eup %1339 }
 0x2dd   : > { %v973_v62 = vmul.f32 %v1340_v60, %v972_v10 }
 0x2df   : > { %v974_v63 = vadd.f32 %v973_v62, %v969_v61 }
 0x2e1   : > { %975 = vst [vmem:[#allocation2] sm:$0xff] %v974_v63  ;;  %977 = vst [vmem:[%s1607_s4] sm:$0xff] %v974_v63 }
 0x2e2 PF: > { %s15_s15 = sadd.s32 1, %s1366_s15  }
 0x2e3   : > { %p12_p6 = scmp.ge.s32.totalorder %s15_s15, 5  }
 0x2e5   :  { %14 = sbr.rel (!%p12_p6) target bundleno = 1 (0x1), region = 82 }
 0x2ec   :  { %989 = vsyncpa [#allocation6], 1 }
 0x2ed   :  { %991 = vsyncpa [#allocation6 + $0x1], 1 }

</bundles_post_ra>
